<compile_context>
chip_gen: v5e
topology: v5e:2x2
jax: 0.10.0
libtpu: 0.0.40
codegen_flags: <defaults>
</compile_context>

<pallas_src>
import numpy as np
import jax
import jax.numpy as jnp
from jax.experimental import pallas as pl
from jax.experimental.pallas import tpu as pltpu

LAMBDA1 = 1e-8     # out_reg weight
LAMBDA2 = 1e-10    # label_reg weight
_PAD_LOGIT = -1.0e4  # finite sentinel: bce term -> 0, sigmoid -> 0 exactly (-inf would NaN via x*t)
_VMEM_TARGET = 24 * 1024 * 1024   # working-set target, headroom under the 32 MiB scoped limit
_VMEM_LIMIT = 32 * 1024 * 1024    # explicit scoped-VMEM limit (valid on v5e / v6e / v7x)


def _round_up(x: int, m: int) -> int:
    return (x + m - 1) // m * m


def _loss_kernel(pred_ref, tgt_ref, m_ref, out_ref):
    """Per-batch-tile partial sums: BCE-with-logits sum (lane 0) and out_reg sum (lane 1)."""
    x = pred_ref[...].astype(jnp.float32)   # (TB, C_pad) logits
    t = tgt_ref[...].astype(jnp.float32)    # (TB, C_pad) targets

    # Stable BCE-with-logits; e = exp(-|x|) is reused for the sigmoid below.
    # Sentinel-padded entries (x = -1e4, t = 0) contribute exactly 0.
    e = jnp.exp(-jnp.abs(x))
    bce_sum = jnp.sum(jnp.maximum(x, 0.0) - x * t + jnp.log1p(e))

    # sigmoid(x) = where(x>=0, 1/(1+e), e/(1+e)); approx reciprocal runs on the EUP slot.
    inv = pl.reciprocal(1.0 + e, approx=True)
    probs = jnp.where(x >= 0.0, inv, e * inv)      # padded entries -> exactly 0

    # out_reg partial: sum(relu(probs[:, c] - probs[:, p])) == sum(relu(probs @ M)).
    # bf16 MXU operands with f32 accumulation; zero rows/cols of M kill all padding.
    regs = jnp.dot(probs.astype(jnp.bfloat16), m_ref[...],
                   preferred_element_type=jnp.float32)   # (TB, NH_pad)
    outreg_sum = jnp.sum(jnp.maximum(regs, 0.0))

    # Lane-dense (1, 8, 128) partial-sum block: lane 0 = bce, lane 1 = out_reg.
    sub = jax.lax.broadcasted_iota(jnp.int32, (1, 8, 128), 1)
    lane = jax.lax.broadcasted_iota(jnp.int32, (1, 8, 128), 2)
    is_bce = jnp.logical_and(sub == 0, lane == 0)
    is_reg = jnp.logical_and(sub == 0, lane == 1)
    out_ref[...] = jnp.where(is_bce, bce_sum, 0.0) + jnp.where(is_reg, outreg_sum, 0.0)


def bce_match_loss(prediction, target, clf_weights, hierarchy, *, block_b: int = 256):
    """Scalar MATCH-BCE loss. hierarchy: list of (parent_idx, child_idx)."""
    B, C = prediction.shape
    Cw, H = clf_weights.shape
    assert Cw == C
    NH = len(hierarchy)

    # ---- label_reg: batch independent, O(NH*H) -> computed in f32 in plain JAX (hoisted). ----
    if NH > 0:
        parents = jnp.asarray([p for p, _ in hierarchy], dtype=jnp.int32)
        children = jnp.asarray([c for _, c in hierarchy], dtype=jnp.int32)
        wdiff = (clf_weights[parents] - clf_weights[children]).astype(jnp.float32)
        label_sq = jnp.sum(wdiff * wdiff)
    else:
        label_sq = jnp.float32(0.0)

    # ---- Padded / tiled sizes: lanes multiple of 128; NH to 256 for full MXU N tiles. ----
    C_pad = _round_up(C, 128)
    NH_pad = max(_round_up(NH, 256), 256)
    m_bytes = C_pad * NH_pad * 2               # bf16 hierarchy matrix (VMEM resident)

    B_eff = _round_up(B, 8)
    TB = _round_up(min(block_b, B_eff), 8)
    # Prefer >= 2 batch tiles so both v7x TensorCores get work under "parallel" sharding.
    if B_eff > 8 and pl.cdiv(B_eff, TB) < 2:
        TB = _round_up(pl.cdiv(B_eff, 2), 8)
    # Shrink TB until double-buffered streamed tiles + M fit the VMEM working-set target.
    stream_itemsize = jnp.dtype(prediction.dtype).itemsize + jnp.dtype(target.dtype).itemsize
    while TB > 8 and 2 * TB * C_pad * stream_itemsize + 2 * m_bytes > _VMEM_TARGET:
        TB = _round_up(TB // 2, 8)
    B_pad = _round_up(B_eff, TB)
    n_tiles = B_pad // TB

    # ---- Static dense +/-1 hierarchy matrix (exact in bf16), zero padded. ----
    m_np = np.zeros((C_pad, NH_pad), dtype=np.float32)
    for idx, (p, c) in enumerate(hierarchy):
        m_np[c, idx] += 1.0
        m_np[p, idx] -= 1.0
    m = jnp.asarray(m_np, dtype=jnp.bfloat16)

    # ---- Sentinel padding (no in-kernel masking): pad logits with -1e4, targets with 0. ----
    def _pad2(a, rows, cols, value):
        pr, pc = rows - a.shape[0], cols - a.shape[1]
        if pr == 0 and pc == 0:
            return a
        return jnp.pad(a, ((0, pr), (0, pc)), constant_values=value)

    pred_p = _pad2(prediction, B_pad, C_pad, _PAD_LOGIT)
    tgt_p = _pad2(target, B_pad, C_pad, 0)

    def _build(m_spec):
        return pl.pallas_call(
            _loss_kernel,
            out_shape=jax.ShapeDtypeStruct((n_tiles, 8, 128), jnp.float32),
            grid_spec=pltpu.PrefetchScalarGridSpec(
                num_scalar_prefetch=0,
                grid=(n_tiles,),
                in_specs=[
                    pl.BlockSpec((TB, C_pad), lambda b: (b, 0)),   # prediction tile (streamed)
                    pl.BlockSpec((TB, C_pad), lambda b: (b, 0)),   # target tile (streamed)
                    m_spec,                                        # hierarchy matrix (resident)
                ],
                out_specs=pl.BlockSpec((1, 8, 128), lambda b: (b, 0, 0)),
            ),
            compiler_params=pltpu.CompilerParams(
                dimension_semantics=("parallel",),   # per-tile partials are independent
                vmem_limit_bytes=_VMEM_LIMIT,
            ),
        )

    try:
        # Constant index_map -> fetched once; single-buffer to halve M's VMEM footprint.
        m_spec = pl.BlockSpec((C_pad, NH_pad), lambda b: (0, 0),
                              pipeline_mode=pl.Buffered(1))
        partials = _build(m_spec)(pred_p, tgt_p, m)
    except Exception:
        # Fallback for Pallas versions without Buffered(1) support: default double buffering.
        m_spec = pl.BlockSpec((C_pad, NH_pad), lambda b: (0, 0))
        partials = _build(m_spec)(pred_p, tgt_p, m)

    bce_total = jnp.sum(partials[:, 0, 0])
    outreg_total = jnp.sum(partials[:, 0, 1])

    loss_clf = bce_total / (B * C)
    return loss_clf + LAMBDA1 * outreg_total + LAMBDA2 * 0.5 * label_sq


def bce_match_loss_ref(prediction, target, clf_weights, hierarchy):
    """Pure-JAX reference mirroring the PyTorch forward."""
    x = prediction.astype(jnp.float32)
    t = target.astype(jnp.float32)
    bce = jnp.maximum(x, 0.0) - x * t + jnp.log1p(jnp.exp(-jnp.abs(x)))
    loss_clf = jnp.mean(bce)
    probs = jax.nn.sigmoid(x)
    regs = jnp.stack([probs[:, c] - probs[:, p] for (p, c) in hierarchy], axis=1)
    out_reg = LAMBDA1 * jnp.sum(jax.nn.relu(regs))
    lregs = jnp.stack([clf_weights[p] - clf_weights[c] for (p, c) in hierarchy], axis=1)
    label_reg = LAMBDA2 * 0.5 * jnp.sum(lregs ** 2)
    return loss_clf + out_reg + label_reg


if __name__ == "__main__":
    key = jax.random.PRNGKey(0)
    k1, k2, k3 = jax.random.split(key, 3)

    # Small shapes that still exercise batch tiling (2 tiles), sentinel row padding (12 -> 16),
    # and C / NH lane padding (96 -> 128 classes, 40 -> 256 hierarchy columns).
    B, C, H = 12, 96, 32
    hierarchy = [(i // 2, i) for i in range(1, 41)]   # 40 (parent, child) pairs, indices < C

    prediction = jax.random.normal(k1, (B, C), dtype=jnp.float32)          # logits
    target = jax.random.bernoulli(k2, 0.5, (B, C)).astype(jnp.float32)     # binary labels
    clf_weights = 0.1 * jax.random.normal(k3, (C, H), dtype=jnp.float32)   # classifier weights

    loss = bce_match_loss(prediction, target, clf_weights, hierarchy, block_b=8)
    loss = jax.block_until_ready(loss)

    loss_ref = bce_match_loss_ref(prediction, target, clf_weights, hierarchy)
    np.testing.assert_allclose(np.asarray(loss), np.asarray(loss_ref), rtol=2e-5, atol=2e-6)

    print("KERNEL_OK")
</pallas_src>

<mosaic_0001>
module attributes {stable_mosaic.version = 11 : i64} {
  func.func @_loss_kernel(%arg0: i32, %arg1: memref<8x128xf32, #tpu.memory_space<vmem>>, %arg2: memref<8x128xf32, #tpu.memory_space<vmem>>, %arg3: memref<128x256xbf16, #tpu.memory_space<vmem>>, %arg4: memref<1x8x128xf32, #tpu.memory_space<vmem>>) attributes {dimension_semantics = [#tpu.dimension_semantics<parallel>], iteration_bounds = array<i64: 2>, scalar_prefetch = 0 : i64, scratch_operands = 0 : i64, tpu.core_type = #tpu.core_type<tc>, window_params = [{transform_indices = @transform_0, window_bounds = array<i64: 8, 128>}, {transform_indices = @transform_1, window_bounds = array<i64: 8, 128>}, {pipeline_mode = #tpu.pipeline_mode<synchronous>, transform_indices = @transform_2, window_bounds = array<i64: 128, 256>}, {transform_indices = @transform_3, window_bounds = array<i64: 1, 8, 128>}]} {
    %c0 = arith.constant 0 : index
    %c0_0 = arith.constant 0 : index
    %0 = vector.load %arg1[%c0, %c0_0] : memref<8x128xf32, #tpu.memory_space<vmem>>, vector<8x128xf32>
    %c0_1 = arith.constant 0 : index
    %c0_2 = arith.constant 0 : index
    %1 = vector.load %arg2[%c0_1, %c0_2] : memref<8x128xf32, #tpu.memory_space<vmem>>, vector<8x128xf32>
    %2 = math.absf %0 : vector<8x128xf32>
    %cst = arith.constant 0.000000e+00 : f32
    %3 = vector.broadcast %cst : f32 to vector<8x128xf32>
    %4 = arith.subf %3, %2 : vector<8x128xf32>
    %5 = math.exp %4 : vector<8x128xf32>
    %cst_3 = arith.constant 0.000000e+00 : f32
    %6 = vector.broadcast %cst_3 : f32 to vector<8x128xf32>
    %7 = arith.maximumf %0, %6 : vector<8x128xf32>
    %8 = arith.mulf %0, %1 : vector<8x128xf32>
    %9 = arith.subf %7, %8 : vector<8x128xf32>
    %10 = math.log1p %5 : vector<8x128xf32>
    %11 = arith.addf %9, %10 : vector<8x128xf32>
    %12 = vector.shape_cast %11 : vector<8x128xf32> to vector<1x8x128xf32>
    %cst_4 = arith.constant dense<0.000000e+00> : vector<1xf32>
    %13 = vector.multi_reduction <add>, %12, %cst_4 [1, 2] : vector<1x8x128xf32> to vector<1xf32>
    %14 = vector.shape_cast %13 : vector<1xf32> to vector<1x1x1xf32>
    %15 = vector.extract %14[0, 0, 0] : f32 from vector<1x1x1xf32>
    %cst_5 = arith.constant 1.000000e+00 : f32
    %16 = vector.broadcast %cst_5 : f32 to vector<8x128xf32>
    %17 = arith.addf %16, %5 : vector<8x128xf32>
    %18 = tpu.reciprocal %17 {approx = true} : vector<8x128xf32> -> vector<8x128xf32>
    %cst_6 = arith.constant 0.000000e+00 : f32
    %19 = vector.broadcast %cst_6 : f32 to vector<8x128xf32>
    %20 = arith.cmpf oge, %0, %19 : vector<8x128xf32>
    %21 = arith.mulf %5, %18 : vector<8x128xf32>
    %22 = arith.select %20, %18, %21 : vector<8x128xi1>, vector<8x128xf32>
    %23 = arith.truncf %22 : vector<8x128xf32> to vector<8x128xbf16>
    %c0_7 = arith.constant 0 : index
    %c0_8 = arith.constant 0 : index
    %24 = vector.load %arg3[%c0_7, %c0_8] : memref<128x256xbf16, #tpu.memory_space<vmem>>, vector<128x256xbf16>
    %cst_9 = arith.constant dense<0.000000e+00> : vector<8x256xf32>
    %25 = tpu.matmul %23, %24, %cst_9 {dimension_numbers = #tpu.dot_dimension_numbers<[1], [0], [0], [1], [0, 0, 1, 1], [], []>} : vector<8x128xbf16>, vector<128x256xbf16>, vector<8x256xf32> -> vector<8x256xf32>
    %cst_10 = arith.constant 0.000000e+00 : f32
    %26 = vector.broadcast %cst_10 : f32 to vector<8x256xf32>
    %27 = arith.maximumf %25, %26 : vector<8x256xf32>
    %28 = vector.shape_cast %27 : vector<8x256xf32> to vector<1x8x256xf32>
    %cst_11 = arith.constant dense<0.000000e+00> : vector<1xf32>
    %29 = vector.multi_reduction <add>, %28, %cst_11 [1, 2] : vector<1x8x256xf32> to vector<1xf32>
    %30 = vector.shape_cast %29 : vector<1xf32> to vector<1x1x1xf32>
    %31 = vector.extract %30[0, 0, 0] : f32 from vector<1x1x1xf32>
    %32 = tpu.iota {dimensions = array<i32: 1>} : vector<1x8x128xi32>
    %33 = tpu.iota {dimensions = array<i32: 2>} : vector<1x8x128xi32>
    %c0_i32 = arith.constant 0 : i32
    %34 = vector.broadcast %c0_i32 : i32 to vector<1x8x128xi32>
    %35 = arith.cmpi eq, %32, %34 : vector<1x8x128xi32>
    %c0_i32_12 = arith.constant 0 : i32
    %36 = vector.broadcast %c0_i32_12 : i32 to vector<1x8x128xi32>
    %37 = arith.cmpi eq, %33, %36 : vector<1x8x128xi32>
    %38 = arith.andi %35, %37 : vector<1x8x128xi1>
    %c0_i32_13 = arith.constant 0 : i32
    %39 = vector.broadcast %c0_i32_13 : i32 to vector<1x8x128xi32>
    %40 = arith.cmpi eq, %32, %39 : vector<1x8x128xi32>
    %c1_i32 = arith.constant 1 : i32
    %41 = vector.broadcast %c1_i32 : i32 to vector<1x8x128xi32>
    %42 = arith.cmpi eq, %33, %41 : vector<1x8x128xi32>
    %43 = arith.andi %40, %42 : vector<1x8x128xi1>
    %cst_14 = arith.constant 0.000000e+00 : f32
    %44 = vector.broadcast %15 : f32 to vector<1x8x128xf32>
    %45 = vector.broadcast %cst_14 : f32 to vector<1x8x128xf32>
    %46 = arith.select %38, %44, %45 : vector<1x8x128xi1>, vector<1x8x128xf32>
    %cst_15 = arith.constant 0.000000e+00 : f32
    %47 = vector.broadcast %31 : f32 to vector<1x8x128xf32>
    %48 = vector.broadcast %cst_15 : f32 to vector<1x8x128xf32>
    %49 = arith.select %43, %47, %48 : vector<1x8x128xi1>, vector<1x8x128xf32>
    %50 = arith.addf %46, %49 : vector<1x8x128xf32>
    %c0_16 = arith.constant 0 : index
    %c0_17 = arith.constant 0 : index
    %c0_18 = arith.constant 0 : index
    %51 = vector.load %arg4[%c0_16, %c0_17, %c0_18] : memref<1x8x128xf32, #tpu.memory_space<vmem>>, vector<1x8x128xf32>
    tpu.vector_store %arg4[%c0_16, %c0_17, %c0_18], %50 {strides = array<i32>} : memref<1x8x128xf32, #tpu.memory_space<vmem>>, vector<1x8x128xf32>,
    return
  }
  func.func @transform_0(%arg0: i32) -> (i32, i32) {
    %c0_i32 = arith.constant 0 : i32
    %c0_i32_0 = arith.constant 0 : i32
    return %arg0, %c0_i32 : i32, i32
  }
  func.func @transform_1(%arg0: i32) -> (i32, i32) {
    %c0_i32 = arith.constant 0 : i32
    %c0_i32_0 = arith.constant 0 : i32
    return %arg0, %c0_i32 : i32, i32
  }
  func.func @transform_2(%arg0: i32) -> (i32, i32) {
    %c0_i32 = arith.constant 0 : i32
    %c0_i32_0 = arith.constant 0 : i32
    %c0_i32_1 = arith.constant 0 : i32
    return %c0_i32, %c0_i32_0 : i32, i32
  }
  func.func @transform_3(%arg0: i32) -> (i32, i32, i32) {
    %c0_i32 = arith.constant 0 : i32
    %c0_i32_0 = arith.constant 0 : i32
    %c0_i32_1 = arith.constant 0 : i32
    return %arg0, %c0_i32, %c0_i32_0 : i32, i32, i32
  }
}

module attributes {stable_mosaic.version = 11 : i64} {
  func.func @_loss_kernel(%arg0: i32, %arg1: memref<8x128xf32, #tpu.memory_space<vmem>>, %arg2: memref<8x128xf32, #tpu.memory_space<vmem>>, %arg3: memref<128x256xbf16, #tpu.memory_space<vmem>>, %arg4: memref<1x8x128xf32, #tpu.memory_space<vmem>>) attributes {dimension_semantics = [#tpu.dimension_semantics<parallel>], iteration_bounds = array<i64: 2>, scalar_prefetch = 0 : i64, scratch_operands = 0 : i64, tpu.core_type = #tpu.core_type<tc>, window_params = [{transform_indices = @transform_0, window_bounds = array<i64: 8, 128>}, {transform_indices = @transform_1, window_bounds = array<i64: 8, 128>}, {pipeline_mode = #tpu.pipeline_mode<synchronous>, transform_indices = @transform_2, window_bounds = array<i64: 128, 256>}, {transform_indices = @transform_3, window_bounds = array<i64: 1, 8, 128>}]} {
    %c0 = arith.constant 0 : index
    %c0_0 = arith.constant 0 : index
    %0 = vector.load %arg1[%c0, %c0_0] : memref<8x128xf32, #tpu.memory_space<vmem>>, vector<8x128xf32>
    %c0_1 = arith.constant 0 : index
    %c0_2 = arith.constant 0 : index
    %1 = vector.load %arg2[%c0_1, %c0_2] : memref<8x128xf32, #tpu.memory_space<vmem>>, vector<8x128xf32>
    %2 = math.absf %0 : vector<8x128xf32>
    %cst = arith.constant 0.000000e+00 : f32
    %3 = vector.broadcast %cst : f32 to vector<8x128xf32>
    %4 = arith.subf %3, %2 : vector<8x128xf32>
    %5 = math.exp %4 : vector<8x128xf32>
    %cst_3 = arith.constant 0.000000e+00 : f32
    %6 = vector.broadcast %cst_3 : f32 to vector<8x128xf32>
    %7 = arith.maximumf %0, %6 : vector<8x128xf32>
    %8 = arith.mulf %0, %1 : vector<8x128xf32>
    %9 = arith.subf %7, %8 : vector<8x128xf32>
    %10 = math.log1p %5 : vector<8x128xf32>
    %11 = arith.addf %9, %10 : vector<8x128xf32>
    %12 = vector.shape_cast %11 : vector<8x128xf32> to vector<1x8x128xf32>
    %cst_4 = arith.constant dense<0.000000e+00> : vector<1xf32>
    %13 = vector.multi_reduction <add>, %12, %cst_4 [1, 2] : vector<1x8x128xf32> to vector<1xf32>
    %14 = vector.shape_cast %13 : vector<1xf32> to vector<1x1x1xf32>
    %15 = vector.extract %14[0, 0, 0] : f32 from vector<1x1x1xf32>
    %cst_5 = arith.constant 1.000000e+00 : f32
    %16 = vector.broadcast %cst_5 : f32 to vector<8x128xf32>
    %17 = arith.addf %16, %5 : vector<8x128xf32>
    %18 = tpu.reciprocal %17 {approx = true} : vector<8x128xf32> -> vector<8x128xf32>
    %cst_6 = arith.constant 0.000000e+00 : f32
    %19 = vector.broadcast %cst_6 : f32 to vector<8x128xf32>
    %20 = arith.cmpf oge, %0, %19 : vector<8x128xf32>
    %21 = arith.mulf %5, %18 : vector<8x128xf32>
    %22 = arith.select %20, %18, %21 : vector<8x128xi1>, vector<8x128xf32>
    %23 = arith.truncf %22 : vector<8x128xf32> to vector<8x128xbf16>
    %c0_7 = arith.constant 0 : index
    %c0_8 = arith.constant 0 : index
    %24 = vector.load %arg3[%c0_7, %c0_8] : memref<128x256xbf16, #tpu.memory_space<vmem>>, vector<128x256xbf16>
    %cst_9 = arith.constant dense<0.000000e+00> : vector<8x256xf32>
    %25 = tpu.matmul %23, %24, %cst_9 {dimension_numbers = #tpu.dot_dimension_numbers<[1], [0], [0], [1], [0, 0, 1, 1], [], []>} : vector<8x128xbf16>, vector<128x256xbf16>, vector<8x256xf32> -> vector<8x256xf32>
    %cst_10 = arith.constant 0.000000e+00 : f32
    %26 = vector.broadcast %cst_10 : f32 to vector<8x256xf32>
    %27 = arith.maximumf %25, %26 : vector<8x256xf32>
    %28 = vector.shape_cast %27 : vector<8x256xf32> to vector<1x8x256xf32>
    %cst_11 = arith.constant dense<0.000000e+00> : vector<1xf32>
    %29 = vector.multi_reduction <add>, %28, %cst_11 [1, 2] : vector<1x8x256xf32> to vector<1xf32>
    %30 = vector.shape_cast %29 : vector<1xf32> to vector<1x1x1xf32>
    %31 = vector.extract %30[0, 0, 0] : f32 from vector<1x1x1xf32>
    %32 = tpu.iota {dimensions = array<i32: 1>} : vector<1x8x128xi32>
    %33 = tpu.iota {dimensions = array<i32: 2>} : vector<1x8x128xi32>
    %c0_i32 = arith.constant 0 : i32
    %34 = vector.broadcast %c0_i32 : i32 to vector<1x8x128xi32>
    %35 = arith.cmpi eq, %32, %34 : vector<1x8x128xi32>
    %c0_i32_12 = arith.constant 0 : i32
    %36 = vector.broadcast %c0_i32_12 : i32 to vector<1x8x128xi32>
    %37 = arith.cmpi eq, %33, %36 : vector<1x8x128xi32>
    %38 = arith.andi %35, %37 : vector<1x8x128xi1>
    %c0_i32_13 = arith.constant 0 : i32
    %39 = vector.broadcast %c0_i32_13 : i32 to vector<1x8x128xi32>
    %40 = arith.cmpi eq, %32, %39 : vector<1x8x128xi32>
    %c1_i32 = arith.constant 1 : i32
    %41 = vector.broadcast %c1_i32 : i32 to vector<1x8x128xi32>
    %42 = arith.cmpi eq, %33, %41 : vector<1x8x128xi32>
    %43 = arith.andi %40, %42 : vector<1x8x128xi1>
    %cst_14 = arith.constant 0.000000e+00 : f32
    %44 = vector.broadcast %15 : f32 to vector<1x8x128xf32>
    %45 = vector.broadcast %cst_14 : f32 to vector<1x8x128xf32>
    %46 = arith.select %38, %44, %45 : vector<1x8x128xi1>, vector<1x8x128xf32>
    %cst_15 = arith.constant 0.000000e+00 : f32
    %47 = vector.broadcast %31 : f32 to vector<1x8x128xf32>
    %48 = vector.broadcast %cst_15 : f32 to vector<1x8x128xf32>
    %49 = arith.select %43, %47, %48 : vector<1x8x128xi1>, vector<1x8x128xf32>
    %50 = arith.addf %46, %49 : vector<1x8x128xf32>
    %c0_16 = arith.constant 0 : index
    %c0_17 = arith.constant 0 : index
    %c0_18 = arith.constant 0 : index
    %51 = vector.load %arg4[%c0_16, %c0_17, %c0_18] : memref<1x8x128xf32, #tpu.memory_space<vmem>>, vector<1x8x128xf32>
    tpu.vector_store %arg4[%c0_16, %c0_17, %c0_18], %50 {strides = array<i32>} : memref<1x8x128xf32, #tpu.memory_space<vmem>>, vector<1x8x128xf32>,
    return
  }
  func.func @transform_0(%arg0: i32) -> (i32, i32) {
    %c0_i32 = arith.constant 0 : i32
    %c0_i32_0 = arith.constant 0 : i32
    return %arg0, %c0_i32 : i32, i32
  }
  func.func @transform_1(%arg0: i32) -> (i32, i32) {
    %c0_i32 = arith.constant 0 : i32
    %c0_i32_0 = arith.constant 0 : i32
    return %arg0, %c0_i32 : i32, i32
  }
  func.func @transform_2(%arg0: i32) -> (i32, i32) {
    %c0_i32 = arith.constant 0 : i32
    %c0_i32_0 = arith.constant 0 : i32
    %c0_i32_1 = arith.constant 0 : i32
    return %c0_i32, %c0_i32_0 : i32, i32
  }
  func.func @transform_3(%arg0: i32) -> (i32, i32, i32) {
    %c0_i32 = arith.constant 0 : i32
    %c0_i32_0 = arith.constant 0 : i32
    %c0_i32_1 = arith.constant 0 : i32
    return %arg0, %c0_i32, %c0_i32_0 : i32, i32, i32
  }
}

</mosaic_0001>

<bundles_post_ra>
// kernel: tpu_custom_call.1
= control target key start
LH: loop header
LB: loop body
LE: loop exit
PB: predicated region body
PF: predicated region fallthrough
CT: control target
= control target key end

     0   :  { %s1084_s0 = inlined_call_operand.hbm [shape: f32[16,128], index: 0, kind: input, shape index: {}]   ;;  %s1085_s1 = inlined_call_operand.hbm [shape: f32[16,128], index: 1, kind: input, shape index: {}]   ;;  %s1086_s2 = inlined_call_operand.hbm [shape: bf16[128,256], index: 2, kind: input, shape index: {}]   ;;  %s1087_s3 = inlined_call_operand.hbm [shape: f32[2,8,128], index: 3, kind: output, shape index: {}]  }
   0x1   :  { %1088 = sst [smem:[#allocation14_spill]] %s1086_s2 }
   0x2   :  { %8 = vsyncpa [#allocation3], 0 }
   0x3   :  { %10 = vsyncpa [#allocation3 + $0x1], 0 }
   0x4   :  { %11 = vsyncpa [#allocation6], 0 }
   0x5   :  { %13 = vsyncpa [#allocation6 + $0x1], 0 }
   0x6   :  { %14 = vsyncpa [#allocation4], 0 }
   0x7   :  { %16 = vsyncpa [#allocation4 + $0x1], 0  ;;  %s904_s12 = smov 0   ;;  %s906_s13 = smov 0  }
   0x8   :  { %s908_s14 = smov 0   ;;  %s910_s15 = smov 0  }
   0x9 LB: > { %s1089_s2 = sld [smem:[#allocation14_spill]]  ;;  %s928_s19 = sadd.s32 4294967295, %s879_s15   ;;  %s879_s15 = sphi %s910_s15, %s1102_s15   ;;  %s875_s14 = sphi %s908_s14, %s1101_s14   ;;  %s871_s13 = sphi %s906_s13, %s1100_s13   ;;  %s867_s12 = sphi %s904_s12, %s1099_s12  }
   0xa   : > { %p545_p0 = scmp.ge.s32.totalorder %s879_s15, 1  ;;  %p43_p1 = scmp.eq.s32.totalorder %s928_s19, 0 }
   0xb   : > { %p126_p2 = scmp.lt.s32.totalorder %s879_s15, 3  ;;  %s881_s21 = smov [#allocation7]  }
   0xc   : > { %s139_s22 = sshll.u32 %s881_s21, 4  ;;  %s882_s23 = smov 128   ;;  %s140_s22 = int_to_ptr.vmem [resolvable:$true] %s139_s22 }
   0xd   : > { %p933_p3 = pnand %p545_p0, %p126_p2  ;;  %s883_s24 = smov 8  }
   0xe   : > { %s544_s25 = sadd.s32 4294967294, %s879_s15   ;;  %s944_s26 = sadd.s32 1, %s879_s15  }
   0xf   : > { %s137_s18 = sshll.u32 %s1089_s2, 4  ;;  %p655_p4 = pneg %p933_p3  ;;  %s138_s18 = int_to_ptr.hbm [resolvable:$true] %s137_s18 }
  0x10   : > { %s29_s27 = sadd.s32 1, %s875_s14  ;;  %s26_s28 = ssub.s32 %s879_s15, %s944_s26 }
  0x11   : > { %p656_p6 = pnand %p655_p4, %p43_p1  ;;  %p36_p7 = scmp.ne.s32.totalorder %s875_s14, %s871_s13 }
  0x12   : > { %p27_p8 = scmp.eq.s32.totalorder %s26_s28, 0  ;;  %p37_p9 = scmp.eq.s32.totalorder %s879_s15, 0 }
  0x13   : > { %658 = dma.hbm_to_vmem [thread:$0]  (!%p656_p6), %s138_s18, 2048, %s140_s22, [#allocation6], %s882_s23, %s882_s23, %s883_s24  }
  0x14   : > { %p42_p10 = scmp.ne.s32.totalorder %s871_s13, %s867_s12  ;;  %p113_p11 = scmp.eq.s32.totalorder %s928_s19, 1 }
  0x15   : > { %s956_s29 = scalar_select %p27_p8, %s875_s14, %s29_s27  }
  0x16   : > { %p958_p12 = por %p37_p9, %p36_p7  ;;  %p964_p13 = por %p43_p1, %p42_p10 }
  0x17   : > { %1091 = sst [smem:[#allocation13_spill]] %s956_s29  ;;  %p968_p0 = por %p113_p11, %p36_p7 }
  0x18   : > { %p119_p2 = scmp.eq.s32.totalorder %s544_s25, 1  ;;  %p671_p4 = scmp.lt.s32.totalorder %s879_s15, 2 }
  0x19   : > { %s153_s6 = sand.u32 1, %s875_s14   ;;  %s549_s9 = sshll.u32 %s879_s15, 3 }
  0x1a   : > { %p974_p6 = por %p119_p2, %p42_p10  ;;  %s548_s8 = sshll.u32 %s153_s6, 3 }
  0x1b   : > { %s161_s16 = scalar_lea.hbm %s1084_s0, %s549_s9  ;;  %s157_s18 = scalar_lea.vmem [#allocation2], %s548_s8 }
  0x1c   : > { %s163_s17 = sshll.u32 %s161_s16, 4  ;;  %s165_s21 = sshll.u32 %s157_s18, 4  ;;  %s164_s17 = int_to_ptr.hbm [resolvable:$true] %s163_s17  ;;  %s166_s21 = int_to_ptr.vmem [resolvable:$true] %s165_s21 }
  0x1d   : > { %p984_p7 = pnand %p671_p4, %p958_p12  ;;  %s180_s25 = scalar_lea.hbm %s1085_s1, %s549_s9 }
  0x1e   : > { %s172_s27 = sand.u32 1, %s879_s15   ;;  %s154_s28 = scalar_lea.sflag [#allocation3], %s153_s6 }
  0x1f   : > { %s745_s10 = sshra.s32 %s164_s17, 4  ;;  %p749_p9 = pneg %p984_p7  ;;  %s746_s10 = int_to_ptr.hbm [resolvable:$true] %s745_s10 }
  0x20   : > { %s747_s11 = scalar_lea.hbm %s746_s10, 8  ;;  %s752_s18 = scalar_lea.hbm %s1084_s0, 16 }
  0x21   : > { %p748_p8 = scmp.ne.s32.totalorder %s746_s10, %s747_s11  ;;  %p753_p12 = scmp.lt.s32.totalorder %s746_s10, %s1084_s0 }
  0x22   : > { %p754_p2 = scmp.lt.s32.totalorder %s752_s18, %s747_s11 }
  0x23   : > { %p750_p10 = pnand %p749_p9, %p748_p8 }
  0x24   : > { %p755_p4 = por %p754_p2, %p753_p12 }
  0x25   : > { %p751_p11 = pneg %p750_p10 }
  0x27   : > { %p756_p5 = pnand %p755_p4, %p751_p11 }
  0x29   : > { %759 = shalt.err (!%p756_p5)
}
  0x2a   : > { %662 = dma.hbm_to_vmem [thread:$0]  (!%p984_p7), %s164_s17, 128, %s166_s21, %s154_s28  }
  0x2b   : > { %s182_s6 = sshll.u32 %s180_s25, 4  ;;  %s176_s9 = scalar_lea.vmem [#allocation5], %s548_s8  ;;  %s183_s6 = int_to_ptr.hbm [resolvable:$true] %s182_s6 }
  0x2c   : > { %s184_s2 = sshll.u32 %s176_s9, 4  ;;  %s173_s29 = scalar_lea.sflag [#allocation6], %s172_s27  ;;  %s185_s2 = int_to_ptr.vmem [resolvable:$true] %s184_s2 }
  0x2d   : > { %s775_s30 = sshra.s32 %s183_s6, 4  ;;  %s782_s18 = scalar_lea.hbm %s1085_s1, 16  ;;  %s776_s30 = int_to_ptr.hbm [resolvable:$true] %s775_s30 }
  0x2e   : > { %s777_s16 = scalar_lea.hbm %s776_s30, 8  ;;  %p783_p5 = scmp.lt.s32.totalorder %s776_s30, %s1085_s1 }
  0x2f   : > { %p778_p8 = scmp.ne.s32.totalorder %s776_s30, %s777_s16  ;;  %p784_p11 = scmp.lt.s32.totalorder %s782_s18, %s777_s16 }
  0x31   : > { %p780_p10 = pnand %p778_p8, %p749_p9  ;;  %p785_p2 = por %p784_p11, %p783_p5 }
  0x33   : > { %p781_p12 = pneg %p780_p10 }
  0x35   : > { %p786_p4 = pnand %p785_p2, %p781_p12 }
  0x37   : > { %789 = shalt.err (!%p786_p4)
}
  0x38   : > { %665 = dma.hbm_to_vmem [thread:$0]  (!%p984_p7), %s183_s6, 128, %s185_s2, %s173_s29  }
  0x39   : > { %193 = sbr.rel (%p933_p3) target bundleno = 418 (0x1a2), region = 32  ;;  %s1019_s8 = sand.u32 (!%p933_p3), 1, %s871_s13  }
  0x3a   : > { %s1022_s21 = sshll.u32 (!%p933_p3), %s1019_s8, 3  ;;  %s196_s25 = scalar_lea.sflag (!%p933_p3), [#allocation3], %s1019_s8 }
  0x3b   : > { %s199_s27 = scalar_lea.vmem (!%p933_p3), [#allocation2], %s1022_s21 }
  0x3e   : > { %850 = dma.done.wait (%p964_p13), %s196_s25, 128  }
  0x3f   : > { %852 = vsyncadd (%p964_p13), %s196_s25, 4294967168  ;;  %s205_s2 = sand.u32 1, %s928_s19   ;;  %s209_s29 = scalar_lea.vmem [#allocation5], %s1022_s21 }
  0x40   : > { %s206_s20 = scalar_lea.sflag [#allocation6], %s205_s2 }
  0x41   : > { %854 = dma.done.wait (%p964_p13), %s206_s20, 128  }
  0x42   : > { %856 = vsyncadd (%p964_p13), %s206_s20, 4294967168 }
  0x43   : > { %858 = dma.done.wait (%p43_p1), [#allocation6], 2048  }
  0x44   : > { %860 = vsyncadd (%p43_p1), [#allocation6], 4294965248  ;;  %v615_v0 = vld [vmem:[#allocation7 + $0x70] sm:$0xf]  ;;  %v640_v1 = vld [vmem:[#allocation7 + $0x74] sm:$0xf0] }
  0x45   : > { %v639_v2 = vld [vmem:[#allocation7 + $0x74] sm:$0xf]  ;;  %v616_v3 = vor.u32 %v640_v1, %v615_v0  ;;  %v617_v4 = vld [vmem:[#allocation7 + $0x78] sm:$0xf0]  ;;  %v607_v5 = vld [vmem:[#allocation7 + $0x60] sm:$0xf] }
  0x46   : > { %v638_v6 = vld [vmem:[#allocation7 + $0x64] sm:$0xf0]  ;;  %v620_v7 = vor.u32 %v639_v2, %v617_v4  ;;  %v637_v8 = vld [vmem:[#allocation7 + $0x64] sm:$0xf]  ;;  %v609_v9 = vld [vmem:[#allocation7 + $0x68] sm:$0xf0] }
  0x47   : > { %373 = vmatpush.bf16.msra.mxu0 %v616_v3  ;;  %v608_v10 = vor.u32 %v638_v6, %v607_v5  ;;  %v612_v11 = vor.u32 %v637_v8, %v609_v9  ;;  %v599_v12 = vld [vmem:[#allocation7 + $0x50] sm:$0xf]  ;;  %v636_v13 = vld [vmem:[#allocation7 + $0x54] sm:$0xf0]  ;;  %v635_v14 = vld [vmem:[#allocation7 + $0x54] sm:$0xf] }
  0x48   : > { %386 = vmatpush.bf16.msra.mxu1 %v620_v7  ;;  %v601_v15 = vld [vmem:[#allocation7 + $0x58] sm:$0xf0]  ;;  %v600_v16 = vor.u32 %v636_v13, %v599_v12  ;;  %v591_v18 = vld [vmem:[#allocation7 + $0x40] sm:$0xf]  ;;  %v634_v19 = vld [vmem:[#allocation7 + $0x44] sm:$0xf0] }
  0x49   : > { %v604_v17 = vor.u32 %v635_v14, %v601_v15  ;;  %v633_v20 = vld [vmem:[#allocation7 + $0x44] sm:$0xf]  ;;  %v593_v21 = vld [vmem:[#allocation7 + $0x48] sm:$0xf0]  ;;  %v592_v23 = vor.u32 %v634_v19, %v591_v18  ;;  %v583_v26 = vld [vmem:[#allocation7 + $0x30] sm:$0xf] }
  0x4a   : > { %v1042_v22 = vld [vmem:[%s199_s27] sm:$0xff]  ;;  %v596_v25 = vor.u32 %v633_v20, %v593_v21  ;;  %v632_v27 = vld [vmem:[#allocation7 + $0x34] sm:$0xf0]  ;;  %v631_v28 = vld [vmem:[#allocation7 + $0x34] sm:$0xf]  ;;  %s622_s4 = sshll.u32 %s928_s19, 3 }
  0x4b   : > { %374 = vmatpush.bf16.msra.mxu0 %v608_v10  ;;  %v245_v24 = vand.u32 2147483647, %v1042_v22  ;;  %v585_v29 = vld [vmem:[#allocation7 + $0x38] sm:$0xf0]  ;;  %v584_v31 = vor.u32 %v632_v27, %v583_v26  ;;  %v575_v34 = vld [vmem:[#allocation7 + $0x20] sm:$0xf]  ;;  %v411_v27 = vlaneseq  ;;  %s437_s6 = scalar_lea.hbm %s1087_s3, %s622_s4 }
  0x4c   : > { %387 = vmatpush.bf16.msra.mxu1 %v612_v11  ;;  %v588_v33 = vor.u32 %v631_v28, %v585_v29  ;;  %v630_v35 = vld [vmem:[#allocation7 + $0x24] sm:$0xf0]  ;;  %v629_v36 = vld [vmem:[#allocation7 + $0x24] sm:$0xf]  ;;  %v577_v37 = vld [vmem:[#allocation7 + $0x28] sm:$0xf0] }
  0x4d   : > { %v246_v30 = vsub.f32 0.0, %v245_v24  ;;  %v576_v38 = vor.u32 %v630_v35, %v575_v34  ;;  %v580_v39 = vor.u32 %v629_v36, %v577_v37  ;;  %v567_v40 = vld [vmem:[#allocation7 + $0x10] sm:$0xf]  ;;  %v628_v41 = vld [vmem:[#allocation7 + $0x14] sm:$0xf0]  ;;  %v249_v57 = vmax.f32 %v1042_v22, 0.0 }
  0x4e   : > { %v627_v42 = vld [vmem:[#allocation7 + $0x14] sm:$0xf]  ;;  %v569_v43 = vld [vmem:[#allocation7 + $0x18] sm:$0xf0]  ;;  %v568_v45 = vor.u32 %v628_v41, %v567_v40  ;;  %v559_v47 = vld [vmem:[#allocation7] sm:$0xf] }
  0x4f   : > { %375 = vmatpush.bf16.msra.mxu0 %v600_v16  ;;  %v247_v32 = vmul.f32 1.442695, %v246_v30  ;;  %v572_v46 = vor.u32 %v627_v42, %v569_v43  ;;  %v626_v48 = vld [vmem:[#allocation7 + $0x4] sm:$0xf0]  ;;  %v625_v51 = vld [vmem:[#allocation7 + $0x4] sm:$0xf] }
  0x50   : > { %388 = vmatpush.bf16.msra.mxu1 %v604_v17  ;;  %v561_v52 = vld [vmem:[#allocation7 + $0x8] sm:$0xf0]  ;;  %v244_v53 = vld [vmem:[%s209_s29] sm:$0xff]  ;;  %v560_v54 = vor.u32 %v626_v48, %v559_v47  ;;  %vm273_vm0 = vcmp.ge.f32.partialorder %v1042_v22, 0.0  ;;  %v412_v28 = vshrl.u32 %v411_v27, 7  ;;  %v414_v29 = vand.u32 127, %v411_v27 }
  0x51   : > { %709 = vpow2.f32 %v247_v32  ;;  %v564_v55 = vor.u32 %v625_v51, %v561_v52  ;;  %v250_v58 = vmul.f32 %v244_v53, %v1042_v22  ;;  %s242_s9 = scalar_lea.vmem [#allocation8], %s1022_s21  ;;  %s441_s10 = sshll.u32 %s437_s6, 4  ;;  %s442_s10 = int_to_ptr.hbm [resolvable:$true] %s441_s10 }
  0x52   : > { %vm415_vm2 = vcmp.eq.s32.totalorder %v412_v28, 0  ;;  %vm416_vm3 = vcmp.eq.s32.totalorder %v414_v29, 0  ;;  %vm418_vm4 = vcmp.eq.s32.totalorder %v414_v29, 1  ;;  %s439_s30 = sshll.u32 %s242_s9, 4  ;;  %s427_s19 = scalar_lea.sflag [#allocation4], %s1019_s8  ;;  %s440_s30 = int_to_ptr.vmem [resolvable:$true] %s439_s30 }
  0x53   : > { %376 = vmatpush.bf16.msra.mxu0 %v592_v23  ;;  %v251_v0 = vsub.f32 %v249_v57, %v250_v58  ;;  %vm417_vm5 = vmand %vm415_vm2, %vm416_vm3  ;;  %s819_s11 = sshra.s32 %s442_s10, 4  ;;  %s825_s21 = scalar_lea.hbm %s1087_s3, 16  ;;  %s820_s11 = int_to_ptr.hbm [resolvable:$true] %s819_s11 }
  0x54   : > { %389 = vmatpush.bf16.msra.mxu1 %v596_v25  ;;  %vm419_vm6 = vmand %vm415_vm2, %vm418_vm4  ;;  %s821_s18 = scalar_lea.hbm %s820_s11, 8  ;;  %p826_p7 = scmp.lt.s32.totalorder %s820_s11, %s1087_s3 }
  0x55   : > { %p822_p1 = scmp.ne.s32.totalorder %s820_s11, %s821_s18  ;;  %p827_p9 = scmp.lt.s32.totalorder %s825_s21, %s821_s18 }
  0x57   : > { %377 = vmatpush.bf16.msra.mxu0 %v584_v31  ;;  %v710_v44 = vpop.eup %709  ;;  %p823_p3 = pnand %p822_p1, %p968_p0  ;;  %p828_p8 = por %p827_p9, %p826_p7 }
  0x58   : > { %390 = vmatpush.bf16.msra.mxu1 %v588_v33  ;;  %v252_v49 = vadd.f32 1.0, %v710_v44  ;;  %v255_v50 = vmul.f32 -0.5, %v710_v44  ;;  %v258_v59 = vand.u32 2147483647, %v710_v44 }
  0x59   : > { %p824_p13 = pneg %p823_p3 }
  0x5a   : > { %711 = vrcp.f32 %v252_v49  ;;  %v256_v56 = vadd.f32 1.0, %v255_v50  ;;  %vm259_vm1 = vcmp.lt.f32.partialorder %v258_v59, 0.0004427343 }
  0x5b   : > { %378 = vmatpush.bf16.msra.mxu0 %v576_v38  ;;  %713 = vlog2.f32 %v252_v49  ;;  %p829_p10 = pnand %p828_p8, %p824_p13 }
  0x5c   : > { %391 = vmatpush.bf16.msra.mxu1 %v580_v39  ;;  %v257_v61 = vmul.f32 %v710_v44, %v256_v56 }
  0x5f   : > { %379 = vmatpush.bf16.msra.mxu0 %v568_v45 }
  0x60   : > { %392 = vmatpush.bf16.msra.mxu1 %v572_v46  ;;  %v712_v60 = vpop.eup %711 }
  0x61   : > { %v714_v62 = vpop.eup %713  ;;  %v274_v63 = vmul.f32 %v712_v60, %v710_v44 }
  0x62   : > { %v254_v1 = vmul.f32 0.6931472, %v714_v62 }
  0x63   : > { %380 = vmatpush.bf16.msra.mxu0 %v560_v54  ;;  %v275_v2 = vsel %vm273_vm0, %v712_v60, %v274_v63 }
  0x64   : > { %393 = vmatpush.bf16.msra.mxu1 %v564_v55  ;;  %v276_v3 = vpack.c.bf16 %v275_v2, %v275_v2  ;;  %v260_v4 = vsel %vm259_vm1, %v257_v61, %v254_v1 }
  0x65   : > { %v261_v5 = vadd.f32 %v260_v4, %v251_v0 }
  0x66   : > { %381 = vmatmul.bf16.vlgmr.msra.gmra.mxu0 %v276_v3 }
  0x67   : > { %394 = vmatmul.bf16.vlgmr.msra.gmra.mxu1 %v276_v3  ;;  %262 = vadd.xlane.f32.xlu0 %v261_v5 }
  0xda   : > { %v263_v6 = vpop.xlane.xlu0 %262 }
  0xdb   : > { %v264_v7 = vrot.slane %v263_v6, 4 }
  0xdd   : > { %v265_v8 = vadd.f32 %v264_v7, %v263_v6 }
  0xdf   : > { %v266_v9 = vrot.slane %v265_v8, 2 }
  0xe1   : > { %v267_v10 = vadd.f32 %v266_v9, %v265_v8 }
  0xe3   : > { %v382_v11 = vpop.f32.mrf.mxu0  ;;  %v268_v13 = vrot.slane %v267_v10, 1 }
  0xe4   : > { %v395_v12 = vpop.f32.mrf.mxu1  ;;  %v399_v14 = vmax.f32 %v382_v11, 0.0 }
  0xe5   : > { %v400_v15 = vmax.f32 %v395_v12, 0.0  ;;  %v269_v16 = vadd.f32 %v268_v13, %v267_v10 }
  0xe7   : > { %v401_v17 = vadd.f32 %v400_v15, %v399_v14  ;;  %641 = vpush %v269_v16 }
  0xe9   : > { %402 = vadd.xlane.f32.xlu0 %v401_v17 }
  0xeb   : > { %v384_v18 = vpop.f32.mrf.mxu0 }
  0xec   : > { %v397_v19 = vpop.f32.mrf.mxu1 }
 0x118   : > { %s642_s22 = spop %641 }
 0x119   : > { %v420_v30 = vstv %s642_s22 }
 0x11a   : > { %v421_v32 = vsel %vm417_vm5, %v420_v30, 0.0 }
 0x15c   : > { %v403_v20 = vpop.xlane.xlu0 %402 }
 0x15d   : > { %v404_v21 = vrot.slane %v403_v20, 4 }
 0x15f   : > { %v405_v22 = vadd.f32 %v404_v21, %v403_v20 }
 0x161   : > { %v406_v23 = vrot.slane %v405_v22, 2 }
 0x163   : > { %v407_v24 = vadd.f32 %v406_v23, %v405_v22 }
 0x165   : > { %v408_v25 = vrot.slane %v407_v24, 1 }
 0x167   : > { %v409_v26 = vadd.f32 %v408_v25, %v407_v24 }
 0x169   : > { %643 = vpush %v409_v26 }
 0x19a   : > { %s644_s16 = spop %643 }
 0x19b   : > { %v422_v31 = vstv %s644_s16 }
 0x19c   : > { %v423_v33 = vsel %vm419_vm6, %v422_v31, 0.0 }
 0x19d   : > { %v424_v34 = vadd.f32 %v423_v33, %v421_v32 }
 0x19f   : > { %425 = vst [vmem:[%s242_s9] sm:$0xff] %v424_v34 }
 0x1a0   : > { %832 = shalt.err (!%p829_p10)
}
 0x1a1   : > { %653 = dma.vmem_to_hbm [thread:$0]  (%p968_p0), %s440_s30, 128, %s442_s10, %s427_s19  }
 0x1a2 PF: > { %s453_s8 = sand.u32 1, %s867_s12   ;;  %p1097_p12 = scmp.ge.s32.totalorder %s879_s15, 2 }
 0x1a3   : > { %s454_s2 = scalar_lea.sflag [#allocation4], %s453_s8 }
 0x1a4   : > { %p667_p5 = pnand %p1097_p12, %p974_p6 }
 0x1a6   : > { %p668_p11 = pneg %p667_p5 }
 0x1a8   : > { %862 = dma.done.wait (%p668_p11), %s454_s2, 128  }
 0x1a9   : > { %864 = vsyncadd (%p668_p11), %s454_s2, 4294967168  ;;  %s1098_s20 = sld [smem:[#allocation13_spill]]  ;;  %p19_p2 = scmp.ge.s32.totalorder %s944_s26, 4  }
 0x1aa   : > { %s1099_s12 = smov %s871_s13  ;;  %s1100_s13 = smov %s875_s14 }
 0x1ab   : > { %s1102_s15 = smov %s944_s26  ;;  %21 = sbr.rel (!%p19_p2) target bundleno = 9 (0x9), region = 94 }
 0x1af   : > { %s1101_s14 = smov %s1098_s20 }
 0x1b0   :  { %460 = vsyncpa [#allocation3], 1 }
 0x1b1   :  { %462 = vsyncpa [#allocation3 + $0x1], 1 }
 0x1b2   :  { %463 = vsyncpa [#allocation6], 1 }
 0x1b3   :  { %465 = vsyncpa [#allocation6 + $0x1], 1 }
 0x1b4   :  { %466 = vsyncpa [#allocation4], 1 }
 0x1b5   :  { %468 = vsyncpa [#allocation4 + $0x1], 1 }

// kernel: tpu_custom_call.1
= control target key start
LH: loop header
LB: loop body
LE: loop exit
PB: predicated region body
PF: predicated region fallthrough
CT: control target
= control target key end

     0   :  { %s1084_s0 = inlined_call_operand.hbm [shape: f32[16,128], index: 0, kind: input, shape index: {}]   ;;  %s1085_s1 = inlined_call_operand.hbm [shape: f32[16,128], index: 1, kind: input, shape index: {}]   ;;  %s1086_s2 = inlined_call_operand.hbm [shape: bf16[128,256], index: 2, kind: input, shape index: {}]   ;;  %s1087_s3 = inlined_call_operand.hbm [shape: f32[2,8,128], index: 3, kind: output, shape index: {}]  }
   0x1   :  { %1088 = sst [smem:[#allocation14_spill]] %s1086_s2 }
   0x2   :  { %8 = vsyncpa [#allocation3], 0 }
   0x3   :  { %10 = vsyncpa [#allocation3 + $0x1], 0 }
   0x4   :  { %11 = vsyncpa [#allocation6], 0 }
   0x5   :  { %13 = vsyncpa [#allocation6 + $0x1], 0 }
   0x6   :  { %14 = vsyncpa [#allocation4], 0 }
   0x7   :  { %16 = vsyncpa [#allocation4 + $0x1], 0  ;;  %s904_s12 = smov 0   ;;  %s906_s13 = smov 0  }
   0x8   :  { %s908_s14 = smov 0   ;;  %s910_s15 = smov 0  }
   0x9 LB: > { %s1089_s2 = sld [smem:[#allocation14_spill]]  ;;  %s928_s19 = sadd.s32 4294967295, %s879_s15   ;;  %s879_s15 = sphi %s910_s15, %s1102_s15   ;;  %s875_s14 = sphi %s908_s14, %s1101_s14   ;;  %s871_s13 = sphi %s906_s13, %s1100_s13   ;;  %s867_s12 = sphi %s904_s12, %s1099_s12  }
   0xa   : > { %p545_p0 = scmp.ge.s32.totalorder %s879_s15, 1  ;;  %p43_p1 = scmp.eq.s32.totalorder %s928_s19, 0 }
   0xb   : > { %p126_p2 = scmp.lt.s32.totalorder %s879_s15, 3  ;;  %s881_s21 = smov [#allocation7]  }
   0xc   : > { %s139_s22 = sshll.u32 %s881_s21, 4  ;;  %s882_s23 = smov 128   ;;  %s140_s22 = int_to_ptr.vmem [resolvable:$true] %s139_s22 }
   0xd   : > { %p933_p3 = pnand %p545_p0, %p126_p2  ;;  %s883_s24 = smov 8  }
   0xe   : > { %s544_s25 = sadd.s32 4294967294, %s879_s15   ;;  %s944_s26 = sadd.s32 1, %s879_s15  }
   0xf   : > { %s137_s18 = sshll.u32 %s1089_s2, 4  ;;  %p655_p4 = pneg %p933_p3  ;;  %s138_s18 = int_to_ptr.hbm [resolvable:$true] %s137_s18 }
  0x10   : > { %s29_s27 = sadd.s32 1, %s875_s14  ;;  %s26_s28 = ssub.s32 %s879_s15, %s944_s26 }
  0x11   : > { %p656_p6 = pnand %p655_p4, %p43_p1  ;;  %p36_p7 = scmp.ne.s32.totalorder %s875_s14, %s871_s13 }
  0x12   : > { %p27_p8 = scmp.eq.s32.totalorder %s26_s28, 0  ;;  %p37_p9 = scmp.eq.s32.totalorder %s879_s15, 0 }
  0x13   : > { %658 = dma.hbm_to_vmem [thread:$0]  (!%p656_p6), %s138_s18, 2048, %s140_s22, [#allocation6], %s882_s23, %s882_s23, %s883_s24  }
  0x14   : > { %p42_p10 = scmp.ne.s32.totalorder %s871_s13, %s867_s12  ;;  %p113_p11 = scmp.eq.s32.totalorder %s928_s19, 1 }
  0x15   : > { %s956_s29 = scalar_select %p27_p8, %s875_s14, %s29_s27  }
  0x16   : > { %p958_p12 = por %p37_p9, %p36_p7  ;;  %p964_p13 = por %p43_p1, %p42_p10 }
  0x17   : > { %1091 = sst [smem:[#allocation13_spill]] %s956_s29  ;;  %p968_p0 = por %p113_p11, %p36_p7 }
  0x18   : > { %p119_p2 = scmp.eq.s32.totalorder %s544_s25, 1  ;;  %p671_p4 = scmp.lt.s32.totalorder %s879_s15, 2 }
  0x19   : > { %s153_s6 = sand.u32 1, %s875_s14   ;;  %s549_s9 = sshll.u32 %s879_s15, 3 }
  0x1a   : > { %p974_p6 = por %p119_p2, %p42_p10  ;;  %s548_s8 = sshll.u32 %s153_s6, 3 }
  0x1b   : > { %s161_s16 = scalar_lea.hbm %s1084_s0, %s549_s9  ;;  %s157_s18 = scalar_lea.vmem [#allocation2], %s548_s8 }
  0x1c   : > { %s163_s17 = sshll.u32 %s161_s16, 4  ;;  %s165_s21 = sshll.u32 %s157_s18, 4  ;;  %s164_s17 = int_to_ptr.hbm [resolvable:$true] %s163_s17  ;;  %s166_s21 = int_to_ptr.vmem [resolvable:$true] %s165_s21 }
  0x1d   : > { %p984_p7 = pnand %p671_p4, %p958_p12  ;;  %s180_s25 = scalar_lea.hbm %s1085_s1, %s549_s9 }
  0x1e   : > { %s172_s27 = sand.u32 1, %s879_s15   ;;  %s154_s28 = scalar_lea.sflag [#allocation3], %s153_s6 }
  0x1f   : > { %s745_s10 = sshra.s32 %s164_s17, 4  ;;  %p749_p9 = pneg %p984_p7  ;;  %s746_s10 = int_to_ptr.hbm [resolvable:$true] %s745_s10 }
  0x20   : > { %s747_s11 = scalar_lea.hbm %s746_s10, 8  ;;  %s752_s18 = scalar_lea.hbm %s1084_s0, 16 }
  0x21   : > { %p748_p8 = scmp.ne.s32.totalorder %s746_s10, %s747_s11  ;;  %p753_p12 = scmp.lt.s32.totalorder %s746_s10, %s1084_s0 }
  0x22   : > { %p754_p2 = scmp.lt.s32.totalorder %s752_s18, %s747_s11 }
  0x23   : > { %p750_p10 = pnand %p749_p9, %p748_p8 }
  0x24   : > { %p755_p4 = por %p754_p2, %p753_p12 }
  0x25   : > { %p751_p11 = pneg %p750_p10 }
  0x27   : > { %p756_p5 = pnand %p755_p4, %p751_p11 }
  0x29   : > { %759 = shalt.err (!%p756_p5)
}
  0x2a   : > { %662 = dma.hbm_to_vmem [thread:$0]  (!%p984_p7), %s164_s17, 128, %s166_s21, %s154_s28  }
  0x2b   : > { %s182_s6 = sshll.u32 %s180_s25, 4  ;;  %s176_s9 = scalar_lea.vmem [#allocation5], %s548_s8  ;;  %s183_s6 = int_to_ptr.hbm [resolvable:$true] %s182_s6 }
  0x2c   : > { %s184_s2 = sshll.u32 %s176_s9, 4  ;;  %s173_s29 = scalar_lea.sflag [#allocation6], %s172_s27  ;;  %s185_s2 = int_to_ptr.vmem [resolvable:$true] %s184_s2 }
  0x2d   : > { %s775_s30 = sshra.s32 %s183_s6, 4  ;;  %s782_s18 = scalar_lea.hbm %s1085_s1, 16  ;;  %s776_s30 = int_to_ptr.hbm [resolvable:$true] %s775_s30 }
  0x2e   : > { %s777_s16 = scalar_lea.hbm %s776_s30, 8  ;;  %p783_p5 = scmp.lt.s32.totalorder %s776_s30, %s1085_s1 }
  0x2f   : > { %p778_p8 = scmp.ne.s32.totalorder %s776_s30, %s777_s16  ;;  %p784_p11 = scmp.lt.s32.totalorder %s782_s18, %s777_s16 }
  0x31   : > { %p780_p10 = pnand %p778_p8, %p749_p9  ;;  %p785_p2 = por %p784_p11, %p783_p5 }
  0x33   : > { %p781_p12 = pneg %p780_p10 }
  0x35   : > { %p786_p4 = pnand %p785_p2, %p781_p12 }
  0x37   : > { %789 = shalt.err (!%p786_p4)
}
  0x38   : > { %665 = dma.hbm_to_vmem [thread:$0]  (!%p984_p7), %s183_s6, 128, %s185_s2, %s173_s29  }
  0x39   : > { %193 = sbr.rel (%p933_p3) target bundleno = 418 (0x1a2), region = 32  ;;  %s1019_s8 = sand.u32 (!%p933_p3), 1, %s871_s13  }
  0x3a   : > { %s1022_s21 = sshll.u32 (!%p933_p3), %s1019_s8, 3  ;;  %s196_s25 = scalar_lea.sflag (!%p933_p3), [#allocation3], %s1019_s8 }
  0x3b   : > { %s199_s27 = scalar_lea.vmem (!%p933_p3), [#allocation2], %s1022_s21 }
  0x3e   : > { %850 = dma.done.wait (%p964_p13), %s196_s25, 128  }
  0x3f   : > { %852 = vsyncadd (%p964_p13), %s196_s25, 4294967168  ;;  %s205_s2 = sand.u32 1, %s928_s19   ;;  %s209_s29 = scalar_lea.vmem [#allocation5], %s1022_s21 }
  0x40   : > { %s206_s20 = scalar_lea.sflag [#allocation6], %s205_s2 }
  0x41   : > { %854 = dma.done.wait (%p964_p13), %s206_s20, 128  }
  0x42   : > { %856 = vsyncadd (%p964_p13), %s206_s20, 4294967168 }
  0x43   : > { %858 = dma.done.wait (%p43_p1), [#allocation6], 2048  }
  0x44   : > { %860 = vsyncadd (%p43_p1), [#allocation6], 4294965248  ;;  %v615_v0 = vld [vmem:[#allocation7 + $0x70] sm:$0xf]  ;;  %v640_v1 = vld [vmem:[#allocation7 + $0x74] sm:$0xf0] }
  0x45   : > { %v639_v2 = vld [vmem:[#allocation7 + $0x74] sm:$0xf]  ;;  %v616_v3 = vor.u32 %v640_v1, %v615_v0  ;;  %v617_v4 = vld [vmem:[#allocation7 + $0x78] sm:$0xf0]  ;;  %v607_v5 = vld [vmem:[#allocation7 + $0x60] sm:$0xf] }
  0x46   : > { %v638_v6 = vld [vmem:[#allocation7 + $0x64] sm:$0xf0]  ;;  %v620_v7 = vor.u32 %v639_v2, %v617_v4  ;;  %v637_v8 = vld [vmem:[#allocation7 + $0x64] sm:$0xf]  ;;  %v609_v9 = vld [vmem:[#allocation7 + $0x68] sm:$0xf0] }
  0x47   : > { %373 = vmatpush.bf16.msra.mxu0 %v616_v3  ;;  %v608_v10 = vor.u32 %v638_v6, %v607_v5  ;;  %v612_v11 = vor.u32 %v637_v8, %v609_v9  ;;  %v599_v12 = vld [vmem:[#allocation7 + $0x50] sm:$0xf]  ;;  %v636_v13 = vld [vmem:[#allocation7 + $0x54] sm:$0xf0]  ;;  %v635_v14 = vld [vmem:[#allocation7 + $0x54] sm:$0xf] }
  0x48   : > { %386 = vmatpush.bf16.msra.mxu1 %v620_v7  ;;  %v601_v15 = vld [vmem:[#allocation7 + $0x58] sm:$0xf0]  ;;  %v600_v16 = vor.u32 %v636_v13, %v599_v12  ;;  %v591_v18 = vld [vmem:[#allocation7 + $0x40] sm:$0xf]  ;;  %v634_v19 = vld [vmem:[#allocation7 + $0x44] sm:$0xf0] }
  0x49   : > { %v604_v17 = vor.u32 %v635_v14, %v601_v15  ;;  %v633_v20 = vld [vmem:[#allocation7 + $0x44] sm:$0xf]  ;;  %v593_v21 = vld [vmem:[#allocation7 + $0x48] sm:$0xf0]  ;;  %v592_v23 = vor.u32 %v634_v19, %v591_v18  ;;  %v583_v26 = vld [vmem:[#allocation7 + $0x30] sm:$0xf] }
  0x4a   : > { %v1042_v22 = vld [vmem:[%s199_s27] sm:$0xff]  ;;  %v596_v25 = vor.u32 %v633_v20, %v593_v21  ;;  %v632_v27 = vld [vmem:[#allocation7 + $0x34] sm:$0xf0]  ;;  %v631_v28 = vld [vmem:[#allocation7 + $0x34] sm:$0xf]  ;;  %s622_s4 = sshll.u32 %s928_s19, 3 }
  0x4b   : > { %374 = vmatpush.bf16.msra.mxu0 %v608_v10  ;;  %v245_v24 = vand.u32 2147483647, %v1042_v22  ;;  %v585_v29 = vld [vmem:[#allocation7 + $0x38] sm:$0xf0]  ;;  %v584_v31 = vor.u32 %v632_v27, %v583_v26  ;;  %v575_v34 = vld [vmem:[#allocation7 + $0x20] sm:$0xf]  ;;  %v411_v27 = vlaneseq  ;;  %s437_s6 = scalar_lea.hbm %s1087_s3, %s622_s4 }
  0x4c   : > { %387 = vmatpush.bf16.msra.mxu1 %v612_v11  ;;  %v588_v33 = vor.u32 %v631_v28, %v585_v29  ;;  %v630_v35 = vld [vmem:[#allocation7 + $0x24] sm:$0xf0]  ;;  %v629_v36 = vld [vmem:[#allocation7 + $0x24] sm:$0xf]  ;;  %v577_v37 = vld [vmem:[#allocation7 + $0x28] sm:$0xf0] }
  0x4d   : > { %v246_v30 = vsub.f32 0.0, %v245_v24  ;;  %v576_v38 = vor.u32 %v630_v35, %v575_v34  ;;  %v580_v39 = vor.u32 %v629_v36, %v577_v37  ;;  %v567_v40 = vld [vmem:[#allocation7 + $0x10] sm:$0xf]  ;;  %v628_v41 = vld [vmem:[#allocation7 + $0x14] sm:$0xf0]  ;;  %v249_v57 = vmax.f32 %v1042_v22, 0.0 }
  0x4e   : > { %v627_v42 = vld [vmem:[#allocation7 + $0x14] sm:$0xf]  ;;  %v569_v43 = vld [vmem:[#allocation7 + $0x18] sm:$0xf0]  ;;  %v568_v45 = vor.u32 %v628_v41, %v567_v40  ;;  %v559_v47 = vld [vmem:[#allocation7] sm:$0xf] }
  0x4f   : > { %375 = vmatpush.bf16.msra.mxu0 %v600_v16  ;;  %v247_v32 = vmul.f32 1.442695, %v246_v30  ;;  %v572_v46 = vor.u32 %v627_v42, %v569_v43  ;;  %v626_v48 = vld [vmem:[#allocation7 + $0x4] sm:$0xf0]  ;;  %v625_v51 = vld [vmem:[#allocation7 + $0x4] sm:$0xf] }
  0x50   : > { %388 = vmatpush.bf16.msra.mxu1 %v604_v17  ;;  %v561_v52 = vld [vmem:[#allocation7 + $0x8] sm:$0xf0]  ;;  %v244_v53 = vld [vmem:[%s209_s29] sm:$0xff]  ;;  %v560_v54 = vor.u32 %v626_v48, %v559_v47  ;;  %vm273_vm0 = vcmp.ge.f32.partialorder %v1042_v22, 0.0  ;;  %v412_v28 = vshrl.u32 %v411_v27, 7  ;;  %v414_v29 = vand.u32 127, %v411_v27 }
  0x51   : > { %709 = vpow2.f32 %v247_v32  ;;  %v564_v55 = vor.u32 %v625_v51, %v561_v52  ;;  %v250_v58 = vmul.f32 %v244_v53, %v1042_v22  ;;  %s242_s9 = scalar_lea.vmem [#allocation8], %s1022_s21  ;;  %s441_s10 = sshll.u32 %s437_s6, 4  ;;  %s442_s10 = int_to_ptr.hbm [resolvable:$true] %s441_s10 }
  0x52   : > { %vm415_vm2 = vcmp.eq.s32.totalorder %v412_v28, 0  ;;  %vm416_vm3 = vcmp.eq.s32.totalorder %v414_v29, 0  ;;  %vm418_vm4 = vcmp.eq.s32.totalorder %v414_v29, 1  ;;  %s439_s30 = sshll.u32 %s242_s9, 4  ;;  %s427_s19 = scalar_lea.sflag [#allocation4], %s1019_s8  ;;  %s440_s30 = int_to_ptr.vmem [resolvable:$true] %s439_s30 }
  0x53   : > { %376 = vmatpush.bf16.msra.mxu0 %v592_v23  ;;  %v251_v0 = vsub.f32 %v249_v57, %v250_v58  ;;  %vm417_vm5 = vmand %vm415_vm2, %vm416_vm3  ;;  %s819_s11 = sshra.s32 %s442_s10, 4  ;;  %s825_s21 = scalar_lea.hbm %s1087_s3, 16  ;;  %s820_s11 = int_to_ptr.hbm [resolvable:$true] %s819_s11 }
  0x54   : > { %389 = vmatpush.bf16.msra.mxu1 %v596_v25  ;;  %vm419_vm6 = vmand %vm415_vm2, %vm418_vm4  ;;  %s821_s18 = scalar_lea.hbm %s820_s11, 8  ;;  %p826_p7 = scmp.lt.s32.totalorder %s820_s11, %s1087_s3 }
  0x55   : > { %p822_p1 = scmp.ne.s32.totalorder %s820_s11, %s821_s18  ;;  %p827_p9 = scmp.lt.s32.totalorder %s825_s21, %s821_s18 }
  0x57   : > { %377 = vmatpush.bf16.msra.mxu0 %v584_v31  ;;  %v710_v44 = vpop.eup %709  ;;  %p823_p3 = pnand %p822_p1, %p968_p0  ;;  %p828_p8 = por %p827_p9, %p826_p7 }
  0x58   : > { %390 = vmatpush.bf16.msra.mxu1 %v588_v33  ;;  %v252_v49 = vadd.f32 1.0, %v710_v44  ;;  %v255_v50 = vmul.f32 -0.5, %v710_v44  ;;  %v258_v59 = vand.u32 2147483647, %v710_v44 }
  0x59   : > { %p824_p13 = pneg %p823_p3 }
  0x5a   : > { %711 = vrcp.f32 %v252_v49  ;;  %v256_v56 = vadd.f32 1.0, %v255_v50  ;;  %vm259_vm1 = vcmp.lt.f32.partialorder %v258_v59, 0.0004427343 }
  0x5b   : > { %378 = vmatpush.bf16.msra.mxu0 %v576_v38  ;;  %713 = vlog2.f32 %v252_v49  ;;  %p829_p10 = pnand %p828_p8, %p824_p13 }
  0x5c   : > { %391 = vmatpush.bf16.msra.mxu1 %v580_v39  ;;  %v257_v61 = vmul.f32 %v710_v44, %v256_v56 }
  0x5f   : > { %379 = vmatpush.bf16.msra.mxu0 %v568_v45 }
  0x60   : > { %392 = vmatpush.bf16.msra.mxu1 %v572_v46  ;;  %v712_v60 = vpop.eup %711 }
  0x61   : > { %v714_v62 = vpop.eup %713  ;;  %v274_v63 = vmul.f32 %v712_v60, %v710_v44 }
  0x62   : > { %v254_v1 = vmul.f32 0.6931472, %v714_v62 }
  0x63   : > { %380 = vmatpush.bf16.msra.mxu0 %v560_v54  ;;  %v275_v2 = vsel %vm273_vm0, %v712_v60, %v274_v63 }
  0x64   : > { %393 = vmatpush.bf16.msra.mxu1 %v564_v55  ;;  %v276_v3 = vpack.c.bf16 %v275_v2, %v275_v2  ;;  %v260_v4 = vsel %vm259_vm1, %v257_v61, %v254_v1 }
  0x65   : > { %v261_v5 = vadd.f32 %v260_v4, %v251_v0 }
  0x66   : > { %381 = vmatmul.bf16.vlgmr.msra.gmra.mxu0 %v276_v3 }
  0x67   : > { %394 = vmatmul.bf16.vlgmr.msra.gmra.mxu1 %v276_v3  ;;  %262 = vadd.xlane.f32.xlu0 %v261_v5 }
  0xda   : > { %v263_v6 = vpop.xlane.xlu0 %262 }
  0xdb   : > { %v264_v7 = vrot.slane %v263_v6, 4 }
  0xdd   : > { %v265_v8 = vadd.f32 %v264_v7, %v263_v6 }
  0xdf   : > { %v266_v9 = vrot.slane %v265_v8, 2 }
  0xe1   : > { %v267_v10 = vadd.f32 %v266_v9, %v265_v8 }
  0xe3   : > { %v382_v11 = vpop.f32.mrf.mxu0  ;;  %v268_v13 = vrot.slane %v267_v10, 1 }
  0xe4   : > { %v395_v12 = vpop.f32.mrf.mxu1  ;;  %v399_v14 = vmax.f32 %v382_v11, 0.0 }
  0xe5   : > { %v400_v15 = vmax.f32 %v395_v12, 0.0  ;;  %v269_v16 = vadd.f32 %v268_v13, %v267_v10 }
  0xe7   : > { %v401_v17 = vadd.f32 %v400_v15, %v399_v14  ;;  %641 = vpush %v269_v16 }
  0xe9   : > { %402 = vadd.xlane.f32.xlu0 %v401_v17 }
  0xeb   : > { %v384_v18 = vpop.f32.mrf.mxu0 }
  0xec   : > { %v397_v19 = vpop.f32.mrf.mxu1 }
 0x118   : > { %s642_s22 = spop %641 }
 0x119   : > { %v420_v30 = vstv %s642_s22 }
 0x11a   : > { %v421_v32 = vsel %vm417_vm5, %v420_v30, 0.0 }
 0x15c   : > { %v403_v20 = vpop.xlane.xlu0 %402 }
 0x15d   : > { %v404_v21 = vrot.slane %v403_v20, 4 }
 0x15f   : > { %v405_v22 = vadd.f32 %v404_v21, %v403_v20 }
 0x161   : > { %v406_v23 = vrot.slane %v405_v22, 2 }
 0x163   : > { %v407_v24 = vadd.f32 %v406_v23, %v405_v22 }
 0x165   : > { %v408_v25 = vrot.slane %v407_v24, 1 }
 0x167   : > { %v409_v26 = vadd.f32 %v408_v25, %v407_v24 }
 0x169   : > { %643 = vpush %v409_v26 }
 0x19a   : > { %s644_s16 = spop %643 }
 0x19b   : > { %v422_v31 = vstv %s644_s16 }
 0x19c   : > { %v423_v33 = vsel %vm419_vm6, %v422_v31, 0.0 }
 0x19d   : > { %v424_v34 = vadd.f32 %v423_v33, %v421_v32 }
 0x19f   : > { %425 = vst [vmem:[%s242_s9] sm:$0xff] %v424_v34 }
 0x1a0   : > { %832 = shalt.err (!%p829_p10)
}
 0x1a1   : > { %653 = dma.vmem_to_hbm [thread:$0]  (%p968_p0), %s440_s30, 128, %s442_s10, %s427_s19  }
 0x1a2 PF: > { %s453_s8 = sand.u32 1, %s867_s12   ;;  %p1097_p12 = scmp.ge.s32.totalorder %s879_s15, 2 }
 0x1a3   : > { %s454_s2 = scalar_lea.sflag [#allocation4], %s453_s8 }
 0x1a4   : > { %p667_p5 = pnand %p1097_p12, %p974_p6 }
 0x1a6   : > { %p668_p11 = pneg %p667_p5 }
 0x1a8   : > { %862 = dma.done.wait (%p668_p11), %s454_s2, 128  }
 0x1a9   : > { %864 = vsyncadd (%p668_p11), %s454_s2, 4294967168  ;;  %s1098_s20 = sld [smem:[#allocation13_spill]]  ;;  %p19_p2 = scmp.ge.s32.totalorder %s944_s26, 4  }
 0x1aa   : > { %s1099_s12 = smov %s871_s13  ;;  %s1100_s13 = smov %s875_s14 }
 0x1ab   : > { %s1102_s15 = smov %s944_s26  ;;  %21 = sbr.rel (!%p19_p2) target bundleno = 9 (0x9), region = 94 }
 0x1af   : > { %s1101_s14 = smov %s1098_s20 }
 0x1b0   :  { %460 = vsyncpa [#allocation3], 1 }
 0x1b1   :  { %462 = vsyncpa [#allocation3 + $0x1], 1 }
 0x1b2   :  { %463 = vsyncpa [#allocation6], 1 }
 0x1b3   :  { %465 = vsyncpa [#allocation6 + $0x1], 1 }
 0x1b4   :  { %466 = vsyncpa [#allocation4], 1 }
 0x1b5   :  { %468 = vsyncpa [#allocation4 + $0x1], 1 }

</bundles_post_ra>
